<compile_context>
chip_gen: v7x
topology: tpu7x:2x2x1
jax: 0.10.0
libtpu: 0.0.40
codegen_flags: <defaults>
</compile_context>

<pallas_src>
import jax
import jax.numpy as jnp
from jax.experimental import pallas as pl
from jax.experimental.pallas import tpu as pltpu


def attn_encoder_kernel(h_ref, c_ref, enc_ref, wdw_h_ref, wdw_c_ref,
                        udw_t_ref, vd_row_ref, bias_row_ref, out_ref):
    # WD([h; c]) as two M=1 MXU dots against pre-transposed (in, out) bf16
    # weight halves.  WD/UD biases were pre-folded into bias_row.
    h = h_ref[0].astype(jnp.bfloat16)                                # (1, H)
    c = c_ref[0].astype(jnp.bfloat16)                                # (1, H)
    wd_row = (jnp.dot(h, wdw_h_ref[...], preferred_element_type=jnp.float32)
              + jnp.dot(c, wdw_c_ref[...], preferred_element_type=jnp.float32)
              + bias_row_ref[...])                                   # (1, H) f32

    # UD(encoder_hts) on the MXU; bf16 operands, f32 accumulation.
    enc = enc_ref[...]                                               # (S, H) f32
    ud = jnp.dot(enc.astype(jnp.bfloat16), udw_t_ref[...],
                 preferred_element_type=jnp.float32)                 # (S, H) f32

    # tanh(WD([h;c]).expand(S,H) + UD(E)) -- broadcast of the single WD row.
    # Elementwise math stays f32 (v5e has no bf16 VPU/EUP).
    t = jnp.tanh(wd_row + ud)                                        # (S, H)

    # VD(.) as a VPU multiply + lane reduce (avoids a degenerate N=1 MXU matmul).
    # VD bias omitted: out_features == 1, so it is a uniform shift removed by
    # the softmax below.
    scores = jnp.sum(t * vd_row_ref[...], axis=-1, keepdims=True)    # (S, 1)

    # Column softmax over the sequence axis == row softmax of the transposed
    # (1, S) tensor in the reference.  Denominator reciprocal goes to the EUP.
    m = jnp.max(scores, axis=0, keepdims=True)                       # (1, 1)
    p = jnp.exp(scores - m)                                          # (S, 1)
    denom = jnp.sum(p, axis=0, keepdims=True)                        # (1, 1)
    w = p * pl.reciprocal(denom, approx=True)                        # (S, 1)

    # attn_applied = attn_weights @ encoder_hts : (1, H), computed from the
    # un-quantized f32 encoder states.
    # TODO(synk): for S in the hundreds+ switch this sublane reduce (and the
    # axis-0 softmax reductions) to an MXU (1,S)@(S,H) dot to avoid serializing
    # on the XLU.
    out_ref[0] = jnp.sum(w * enc, axis=0, keepdims=True)             # (1, H)


def prepare_params(params):
    """One-time parameter preparation (NOT in the per-step path).

    Stores WD / UD pre-transposed in (in_features, out_features) layout as bf16
    MXU operands, folds the WD + UD biases into a single f32 row, and drops the
    VD bias (valid only because VD.out_features == 1: a uniform additive shift
    of the scores is removed by the softmax).
    """
    wd_w, wd_b, ud_w, ud_b, vd_w, vd_b = params
    del vd_b
    hidden = ud_w.shape[0]
    wdw_t = wd_w.T                                   # (2H, H): (in, out) layout
    return dict(
        wdw_h=wdw_t[:hidden].astype(jnp.bfloat16),   # (H, H) half acting on h
        wdw_c=wdw_t[hidden:].astype(jnp.bfloat16),   # (H, H) half acting on c
        udw_t=ud_w.T.astype(jnp.bfloat16),           # (H, H)
        vd_row=vd_w.astype(jnp.float32),             # (1, H)
        bias_row=(wd_b + ud_b).reshape(1, hidden).astype(jnp.float32),  # (1, H)
    )


@jax.jit
def attn_encoder_forward(hidden, cell, encoder_hts, prep):
    """hidden, cell: (1, 1, H); encoder_hts: (S, H). Returns (1, 1, H)."""
    H = hidden.shape[-1]
    S = encoder_hts.shape[0]

    vmem = pl.BlockSpec(memory_space=pltpu.MemorySpace.VMEM)
    cost = pl.CostEstimate(
        # WD gemv + UD matmul + VD reduce + context reduce
        flops=4 * H * H + 2 * S * H * H + 4 * S * H,
        transcendentals=S * H + S + 1,                 # tanh + exp + reciprocal
        bytes_accessed=(4 * 2 * H                      # hidden + cell (f32)
                        + 4 * S * H                    # encoder states (f32)
                        + 2 * 3 * H * H                # bf16 WD halves + UD
                        + 4 * 2 * H                    # vd_row + bias_row
                        + 4 * H),                      # (1, 1, H) output write
    )

    # NOTE(lane density): production H = 256 is lane-dense (2 x 128); the H = 32
    # test shape runs with masked lanes, which is fine for correctness testing.
    # TODO(synk): if this attention runs over B query states / decode steps at
    # once, add a leading grid axis with constant-index BlockSpecs for the
    # weights (keeping them VMEM-resident across iterations) and mark it
    # dimension_semantics=(pltpu.PARALLEL,) to use both v7x TensorCores.
    return pl.pallas_call(
        attn_encoder_kernel,
        out_shape=jax.ShapeDtypeStruct((1, 1, H), jnp.float32),
        in_specs=[vmem] * 8,
        out_specs=vmem,
        cost_estimate=cost,
    )(hidden, cell, encoder_hts,
      prep["wdw_h"], prep["wdw_c"], prep["udw_t"],
      prep["vd_row"], prep["bias_row"])


def reference_forward(hidden, cell, encoder_hts, params):
    """Pure-JAX reference mirroring the PyTorch forward exactly (incl. vd_b)."""
    wd_w, wd_b, ud_w, ud_b, vd_w, vd_b = params
    S = encoder_hts.shape[0]
    ht_cell = jnp.concatenate([hidden[0], cell[0]], axis=1)           # (1, 2H)
    wd = ht_cell @ wd_w.T + wd_b                                      # (1, H)
    wd = jnp.broadcast_to(wd, (S, wd.shape[-1]))                      # expand
    ud = encoder_hts @ ud_w.T + ud_b                                  # (S, H)
    scores = jnp.tanh(wd + ud) @ vd_w.T + vd_b                        # (S, 1)
    attn = jax.nn.softmax(scores.T, axis=1)                           # (1, S)
    return attn[None] @ encoder_hts[None]                             # (1, 1, H)


def init_params(key, hidden_size):
    """Deterministic synthetic parameters matching nn.Linear shapes."""
    ks = jax.random.split(key, 6)

    def lin(kw, kb, out_f, in_f):
        bound = 1.0 / jnp.sqrt(in_f)
        w = jax.random.uniform(kw, (out_f, in_f), jnp.float32, -bound, bound)
        b = jax.random.uniform(kb, (out_f,), jnp.float32, -bound, bound)
        return w, b

    wd_w, wd_b = lin(ks[0], ks[1], hidden_size, 2 * hidden_size)   # WD
    ud_w, ud_b = lin(ks[2], ks[3], hidden_size, hidden_size)       # UD
    vd_w, vd_b = lin(ks[4], ks[5], 1, hidden_size)                 # VD
    return (wd_w, wd_b, ud_w, ud_b, vd_w, vd_b)


if __name__ == "__main__":
    HIDDEN = 32     # hidden_size (small test size; production is 256)
    ATTN = 8        # attn_size == number of encoder time steps

    key = jax.random.PRNGKey(0)
    k_p, k_h, k_c, k_e = jax.random.split(key, 4)

    params = init_params(k_p, HIDDEN)
    prep = prepare_params(params)            # one-time: transpose / cast / fold
    hidden = jax.random.normal(k_h, (1, 1, HIDDEN), jnp.float32)
    cell = jax.random.normal(k_c, (1, 1, HIDDEN), jnp.float32)
    encoder_hts = jax.random.normal(k_e, (ATTN, HIDDEN), jnp.float32)

    out = attn_encoder_forward(hidden, cell, encoder_hts, prep)
    out = jax.block_until_ready(out)

    ref = reference_forward(hidden, cell, encoder_hts, params)
    assert out.shape == (1, 1, HIDDEN), out.shape
    max_err = float(jnp.max(jnp.abs(out - ref)))
    # Tolerance covers the bf16 MXU operands (WD/UD weights + the activations
    # feeding the dots, ~1e-2 worst case after softmax) and the EUP approximate
    # reciprocal in the softmax denominator; everything else is exact f32.
    assert jnp.allclose(out, ref, atol=2e-2, rtol=2e-2), \
        f"mismatch: max abs err {max_err}"

    print("KERNEL_OK")
</pallas_src>

<mosaic_0001>
module attributes {stable_mosaic.version = 11 : i64} {
  func.func @attn_encoder_kernel(%arg0: memref<1x1x32xf32, #tpu.memory_space<vmem>>, %arg1: memref<1x1x32xf32, #tpu.memory_space<vmem>>, %arg2: memref<8x32xf32, #tpu.memory_space<vmem>>, %arg3: memref<32x32xbf16, #tpu.memory_space<vmem>>, %arg4: memref<32x32xbf16, #tpu.memory_space<vmem>>, %arg5: memref<32x32xbf16, #tpu.memory_space<vmem>>, %arg6: memref<1x32xf32, #tpu.memory_space<vmem>>, %arg7: memref<1x32xf32, #tpu.memory_space<vmem>>, %arg8: memref<1x1x32xf32, #tpu.memory_space<vmem>>) attributes {dimension_semantics = [], scalar_prefetch = 0 : i64, scratch_operands = 0 : i64, tpu.core_type = #tpu.core_type<tc>} {
    %c0 = arith.constant 0 : index
    %c0_0 = arith.constant 0 : index
    %c0_1 = arith.constant 0 : index
    %0 = vector.load %arg0[%c0, %c0_0, %c0_1] : memref<1x1x32xf32, #tpu.memory_space<vmem>>, vector<1x1x32xf32>
    %1 = vector.shape_cast %0 : vector<1x1x32xf32> to vector<1x32xf32>
    %2 = arith.truncf %1 : vector<1x32xf32> to vector<1x32xbf16>
    %c0_2 = arith.constant 0 : index
    %c0_3 = arith.constant 0 : index
    %c0_4 = arith.constant 0 : index
    %3 = vector.load %arg1[%c0_2, %c0_3, %c0_4] : memref<1x1x32xf32, #tpu.memory_space<vmem>>, vector<1x1x32xf32>
    %4 = vector.shape_cast %3 : vector<1x1x32xf32> to vector<1x32xf32>
    %5 = arith.truncf %4 : vector<1x32xf32> to vector<1x32xbf16>
    %c0_5 = arith.constant 0 : index
    %c0_6 = arith.constant 0 : index
    %6 = vector.load %arg3[%c0_5, %c0_6] : memref<32x32xbf16, #tpu.memory_space<vmem>>, vector<32x32xbf16>
    %cst = arith.constant dense<0.000000e+00> : vector<1x32xf32>
    %7 = tpu.matmul %2, %6, %cst {dimension_numbers = #tpu.dot_dimension_numbers<[1], [0], [0], [1], [0, 0, 1, 1], [], []>} : vector<1x32xbf16>, vector<32x32xbf16>, vector<1x32xf32> -> vector<1x32xf32>
    %c0_7 = arith.constant 0 : index
    %c0_8 = arith.constant 0 : index
    %8 = vector.load %arg4[%c0_7, %c0_8] : memref<32x32xbf16, #tpu.memory_space<vmem>>, vector<32x32xbf16>
    %cst_9 = arith.constant dense<0.000000e+00> : vector<1x32xf32>
    %9 = tpu.matmul %5, %8, %cst_9 {dimension_numbers = #tpu.dot_dimension_numbers<[1], [0], [0], [1], [0, 0, 1, 1], [], []>} : vector<1x32xbf16>, vector<32x32xbf16>, vector<1x32xf32> -> vector<1x32xf32>
    %10 = arith.addf %7, %9 : vector<1x32xf32>
    %c0_10 = arith.constant 0 : index
    %c0_11 = arith.constant 0 : index
    %11 = vector.load %arg7[%c0_10, %c0_11] : memref<1x32xf32, #tpu.memory_space<vmem>>, vector<1x32xf32>
    %12 = arith.addf %10, %11 : vector<1x32xf32>
    %c0_12 = arith.constant 0 : index
    %c0_13 = arith.constant 0 : index
    %13 = vector.load %arg2[%c0_12, %c0_13] : memref<8x32xf32, #tpu.memory_space<vmem>>, vector<8x32xf32>
    %14 = arith.truncf %13 : vector<8x32xf32> to vector<8x32xbf16>
    %c0_14 = arith.constant 0 : index
    %c0_15 = arith.constant 0 : index
    %15 = vector.load %arg5[%c0_14, %c0_15] : memref<32x32xbf16, #tpu.memory_space<vmem>>, vector<32x32xbf16>
    %cst_16 = arith.constant dense<0.000000e+00> : vector<8x32xf32>
    %16 = tpu.matmul %14, %15, %cst_16 {dimension_numbers = #tpu.dot_dimension_numbers<[1], [0], [0], [1], [0, 0, 1, 1], [], []>} : vector<8x32xbf16>, vector<32x32xbf16>, vector<8x32xf32> -> vector<8x32xf32>
    %17 = vector.broadcast %12 : vector<1x32xf32> to vector<8x32xf32>
    %18 = arith.addf %17, %16 : vector<8x32xf32>
    %19 = math.tanh %18 : vector<8x32xf32>
    %c0_17 = arith.constant 0 : index
    %c0_18 = arith.constant 0 : index
    %20 = vector.load %arg6[%c0_17, %c0_18] : memref<1x32xf32, #tpu.memory_space<vmem>>, vector<1x32xf32>
    %21 = vector.broadcast %20 : vector<1x32xf32> to vector<8x32xf32>
    %22 = arith.mulf %19, %21 : vector<8x32xf32>
    %cst_19 = arith.constant dense<0.000000e+00> : vector<8xf32>
    %23 = vector.multi_reduction <add>, %22, %cst_19 [1] : vector<8x32xf32> to vector<8xf32>
    %24 = vector.shape_cast %23 : vector<8xf32> to vector<8x1xf32>
    %cst_20 = arith.constant dense<0xFF800000> : vector<1xf32>
    %25 = vector.multi_reduction <maximumf>, %24, %cst_20 [0] : vector<8x1xf32> to vector<1xf32>
    %26 = vector.shape_cast %25 : vector<1xf32> to vector<1x1xf32>
    %27 = vector.broadcast %26 : vector<1x1xf32> to vector<8x1xf32>
    %28 = arith.subf %24, %27 : vector<8x1xf32>
    %29 = math.exp %28 : vector<8x1xf32>
    %cst_21 = arith.constant dense<0.000000e+00> : vector<1xf32>
    %30 = vector.multi_reduction <add>, %29, %cst_21 [0] : vector<8x1xf32> to vector<1xf32>
    %31 = vector.shape_cast %30 : vector<1xf32> to vector<1x1xf32>
    %32 = tpu.reciprocal %31 {approx = true} : vector<1x1xf32> -> vector<1x1xf32>
    %33 = vector.broadcast %32 : vector<1x1xf32> to vector<8x1xf32>
    %34 = arith.mulf %29, %33 : vector<8x1xf32>
    %35 = vector.broadcast %34 : vector<8x1xf32> to vector<8x32xf32>
    %36 = arith.mulf %35, %13 : vector<8x32xf32>
    %cst_22 = arith.constant dense<0.000000e+00> : vector<32xf32>
    %37 = vector.multi_reduction <add>, %36, %cst_22 [0] : vector<8x32xf32> to vector<32xf32>
    %38 = vector.shape_cast %37 : vector<32xf32> to vector<1x32xf32>
    %c0_23 = arith.constant 0 : index
    %c0_24 = arith.constant 0 : index
    %c0_25 = arith.constant 0 : index
    %39 = vector.load %arg8[%c0_23, %c0_24, %c0_25] : memref<1x1x32xf32, #tpu.memory_space<vmem>>, vector<1x1x32xf32>
    %40 = vector.shape_cast %39 : vector<1x1x32xf32> to vector<1x32xf32>
    %41 = vector.shape_cast %38 : vector<1x32xf32> to vector<1x1x32xf32>
    tpu.vector_store %arg8[%c0_23, %c0_24, %c0_25], %41 {strides = array<i32>} : memref<1x1x32xf32, #tpu.memory_space<vmem>>, vector<1x1x32xf32>,
    return
  }
}

</mosaic_0001>

<bundles_post_ra>
// kernel: attn_encoder_forward.1
= control target key start
LH: loop header
LB: loop body
LE: loop exit
PB: predicated region body
PF: predicated region fallthrough
CT: control target
= control target key end

     0   :  { %13 = vsyncpa [#allocation3], 0  ;;  %s648_s0 = inlined_call_operand.hbm [shape: f32[1,1,32], index: 0, kind: input, shape index: {}]   ;;  %s649_s1 = inlined_call_operand.vmem [shape: f32[1,1,32], index: 1, kind: input, shape index: {}]   ;;  %s650_s2 = inlined_call_operand.hbm [shape: f32[8,32], index: 2, kind: input, shape index: {}]   ;;  %s651_s3 = inlined_call_operand.vmem [shape: bf16[32,32], index: 3, kind: input, shape index: {}]   ;;  %s652_s4 = inlined_call_operand.hbm [shape: bf16[32,32], index: 4, kind: input, shape index: {}]   ;;  %s653_s5 = inlined_call_operand.hbm [shape: bf16[32,32], index: 5, kind: input, shape index: {}]   ;;  %s654_s6 = inlined_call_operand.vmem [shape: f32[1,32], index: 6, kind: input, shape index: {}]   ;;  %s655_s7 = inlined_call_operand.vmem [shape: f32[1,32], index: 7, kind: input, shape index: {}]   ;;  %s656_s8 = inlined_call_operand.hbm [shape: f32[1,1,32], index: 8, kind: output, shape index: {}]  }
   0x1   :  { %14 = vsyncpa [#allocation6], 0 }
   0x2   :  { %15 = vsyncpa [#allocation9], 0 }
   0x3   :  { %16 = vsyncpa [#allocation4], 0  ;;  %s511_s27 = smov [#allocation5]   ;;  %s512_s29 = smov [#allocation2]  }
   0x4   :  { %s35_s28 = sshll.u32 %s511_s27, 4  ;;  %s23_s30 = sshll.u32 %s512_s29, 4  ;;  %s36_s28 = int_to_ptr.vmem [resolvable:$true] %s35_s28  ;;  %s24_s30 = int_to_ptr.vmem [resolvable:$true] %s23_s30 }
   0x5   :  { %s393_s11 = scalar_lea.hbm %s650_s2, 128 }
   0x6   :  { %p394_p0 = scmp.ne.s32.totalorder %s650_s2, %s393_s11  ;;  %p397_p1 = scmp.lt.u32.totalorder %s393_s11, %s650_s2 }
   0x8   :  { %p399_p2 = pnand %p397_p1, %p394_p0 }
   0xa   :  { %402 = shalt.err (!%p399_p2)
}
   0xb   :  { %s403_s16 = scalar_lea.vmem %s36_s28, 128  ;;  %p408_p4 = scmp.lt.s32.totalorder %s36_s28, %s36_s28 }
   0xc   :  { %p404_p3 = scmp.ne.s32.totalorder %s36_s28, %s403_s16  ;;  %p409_p5 = scmp.lt.s32.totalorder %s403_s16, %s403_s16 }
   0xe   :  { %p410_p6 = por %p409_p5, %p408_p4 }
  0x10   :  { %p411_p7 = pnand %p410_p6, %p404_p3 }
  0x12   :  { %414 = shalt.err (!%p411_p7)
}
  0x13   :  { %38 = dma.hbm_to_vmem [thread:$0]  %s650_s2, 128, %s36_s28, [#allocation6]  }
  0x14   :  { %s415_s21 = scalar_lea.hbm %s648_s0, 16 }
  0x15   :  { %p416_p8 = scmp.ne.s32.totalorder %s648_s0, %s415_s21  ;;  %p419_p9 = scmp.lt.u32.totalorder %s415_s21, %s648_s0 }
  0x17   :  { %p421_p10 = pnand %p419_p9, %p416_p8 }
  0x19   :  { %424 = shalt.err (!%p421_p10)
}
  0x1a   :  { %s425_s26 = scalar_lea.vmem %s24_s30, 16  ;;  %s429_s27 = scalar_lea.vmem %s24_s30, 32 }
  0x1b   :  { %p426_p11 = scmp.ne.s32.totalorder %s24_s30, %s425_s26  ;;  %p430_p12 = scmp.lt.s32.totalorder %s24_s30, %s24_s30 }
  0x1c   :  { %p431_p13 = scmp.lt.s32.totalorder %s429_s27, %s425_s26 }
  0x1e   :  { %p432_p0 = por %p431_p13, %p430_p12 }
  0x20   :  { %p433_p1 = pnand %p432_p0, %p426_p11 }
  0x22   :  { %436 = shalt.err (!%p433_p1)
}
  0x23   :  { %26 = dma.hbm_to_vmem [thread:$0]  %s648_s0, 16, %s24_s30, [#allocation3]  }
  0x24   :  { %s513_s29 = smov [#allocation7]   ;;  %s437_s12 = scalar_lea.hbm %s652_s4, 256 }
  0x25   :  { %s46_s9 = sshll.u32 %s513_s29, 4  ;;  %p438_p2 = scmp.ne.s32.totalorder %s652_s4, %s437_s12  ;;  %s47_s9 = int_to_ptr.vmem [resolvable:$true] %s46_s9 }
  0x26   :  { %p441_p3 = scmp.lt.u32.totalorder %s437_s12, %s652_s4 }
  0x28   :  { %p443_p4 = pnand %p441_p3, %p438_p2 }
  0x2a   :  { %446 = shalt.err (!%p443_p4)
}
  0x2b   :  { %s447_s17 = scalar_lea.vmem %s47_s9, 256  ;;  %p452_p6 = scmp.lt.s32.totalorder %s47_s9, %s47_s9 }
  0x2c   :  { %p448_p5 = scmp.ne.s32.totalorder %s47_s9, %s447_s17  ;;  %p453_p7 = scmp.lt.s32.totalorder %s447_s17, %s447_s17 }
  0x2e   :  { %p454_p8 = por %p453_p7, %p452_p6 }
  0x30   :  { %p455_p9 = pnand %p454_p8, %p448_p5 }
  0x32   :  { %458 = shalt.err (!%p455_p9)
}
  0x33   :  { %s514_s0 = smov 64   ;;  %s515_s30 = smov 4  }
  0x34   :  { %52 = dma.hbm_to_vmem [thread:$0]  %s652_s4, 256, %s47_s9, [#allocation6], %s514_s0, %s514_s0, %s515_s30  }
  0x35   :  { %s516_s20 = smov [#allocation8]   ;;  %s459_s24 = scalar_lea.hbm %s653_s5, 256 }
  0x36   :  { %s58_s21 = sshll.u32 %s516_s20, 4  ;;  %p460_p10 = scmp.ne.s32.totalorder %s653_s5, %s459_s24  ;;  %s59_s21 = int_to_ptr.vmem [resolvable:$true] %s58_s21 }
  0x37   :  { %p463_p11 = scmp.lt.u32.totalorder %s459_s24, %s653_s5 }
  0x39   :  { %p465_p12 = pnand %p463_p11, %p460_p10 }
  0x3b   :  { %468 = shalt.err (!%p465_p12)
}
  0x3c   :  { %s469_s28 = scalar_lea.vmem %s59_s21, 256  ;;  %p474_p0 = scmp.lt.s32.totalorder %s59_s21, %s59_s21 }
  0x3d   :  { %p470_p13 = scmp.ne.s32.totalorder %s59_s21, %s469_s28  ;;  %p475_p1 = scmp.lt.s32.totalorder %s469_s28, %s469_s28 }
  0x3f   :  { %p476_p2 = por %p475_p1, %p474_p0 }
  0x41   :  { %p477_p3 = pnand %p476_p2, %p470_p13 }
  0x43   :  { %480 = shalt.err (!%p477_p3)
}
  0x44   :  { %64 = dma.hbm_to_vmem [thread:$0]  %s653_s5, 256, %s59_s21, [#allocation9], %s514_s0, %s514_s0, %s515_s30  }
  0x45   :  { %503 = dma.done.wait [#allocation3], 16  }
  0x46   :  { %504 = vsyncadd [#allocation3], 4294967280 }
  0x47   :  { %505 = dma.done.wait [#allocation6], 384  }
  0x48   :  { %506 = vsyncadd [#allocation6], 4294966912 }
  0x49   :  { %507 = dma.done.wait [#allocation9], 256  }
  0x4a   :  { %508 = vsyncadd [#allocation9], 4294967040  ;;  %v517_v0 = vmov 0.0   ;;  %vm518_vm0 = vmmov 0   ;;  %v381_v1 = vld [vmem:[#allocation7] sm:$0xff]   ;;  %v383_v3 = vld [vmem:[#allocation7 + $0x8] sm:$0xff]   ;;  %v268_v13 = vlaneseq }
  0x4b   :  { %348 = vmatprep.subr.bf16.mxu0 %v517_v0  ;;  %356 = vmatprep.subr.bf16.mxu1 %v517_v0  ;;  %v382_v2 = vld [vmem:[%s651_s3] sm:$0xff]   ;;  %v384_v4 = vld [vmem:[%s651_s3 + $0x8] sm:$0xff]   ;;  %v82_v6 = vld [vmem:[#allocation2] sm:$0x1]  ;;  %vm106_vm1 = vcmask 261120   ;;  %vm310_vm2 = vcmask 253952  }
  0x4c   :  { %352 = vmatprep.mubr.msk.bf16.mxu0 %vm518_vm0, %v517_v0  ;;  %360 = vmatprep.mubr.msk.bf16.mxu1 %vm518_vm0, %v517_v0  ;;  %v84_v5 = vld [vmem:[%s649_s1] sm:$0x1]  ;;  %v83_v8 = vpack.c.bf16 %v82_v6, %v82_v6  ;;  %v385_v9 = vld [vmem:[#allocation8] sm:$0xff]   ;;  %v386_v10 = vld [vmem:[#allocation8 + $0x8] sm:$0xff]   ;;  %v269_v14 = vshrl.u32 %v268_v13, 7 }
  0x4d   :  { %349 = vmatpush3.bf16.msra.mxu0 %v381_v1  ;;  %357 = vmatpush3.bf16.msra.mxu1 %v382_v2  ;;  %v85_v7 = vpack.c.bf16 %v84_v5, %v84_v5  ;;  %v207_v11 = vld [vmem:[#allocation5] sm:$0xff]  ;;  %v205_v17 = vld [vmem:[%s655_s7] sm:$0x1] }
  0x4e   :  { %350 = vmatprep.subr.bf16.mxu0 %v517_v0  ;;  %358 = vmatprep.subr.bf16.mxu1 %v517_v0  ;;  %v208_v12 = vpack.c.bf16 %v207_v11, %v207_v11  ;;  %v270_v24 = vsub.s32 0, %v269_v14  ;;  %v338_v33 = vld [vmem:[%s654_s6] ss:$0 sm:$0xff]  ;;  %s519_s6 = smov [#allocation10]  }
  0x4f   :  { %s318_s7 = sshll.u32 %s519_s6, 4  ;;  %s319_s7 = int_to_ptr.vmem [resolvable:$true] %s318_s7 }
  0x50   :  { %s481_s16 = scalar_lea.vmem %s319_s7, 16  ;;  %s485_s17 = scalar_lea.vmem %s319_s7, 32 }
  0x51   :  { %351 = vmatpush3.bf16.msra.mxu0 %v383_v3  ;;  %359 = vmatpush3.bf16.msra.mxu1 %v384_v4  ;;  %p482_p4 = scmp.ne.s32.totalorder %s319_s7, %s481_s16  ;;  %p486_p5 = scmp.lt.s32.totalorder %s319_s7, %s319_s7 }
  0x52   :  { %364 = vmatprep.subr.bf16.mxu0 %v517_v0  ;;  %p487_p6 = scmp.lt.s32.totalorder %s485_s17, %s481_s16 }
  0x54   :  { %353 = vmatmul.mubr.msk.bf16.vlgmr.msra.gmra.mrb[0].mxu0 %vm106_vm1, %v85_v7  ;;  %361 = vmatmul.mubr.msk.bf16.vlgmr.msra.gmra.mrb[0].mxu1 %vm106_vm1, %v83_v8  ;;  %p488_p7 = por %p487_p6, %p486_p5 }
  0x55   :  { %365 = vmatpush3.bf16.msra.mxu0 %v385_v9  ;;  %368 = vmatprep.mubr.msk.bf16.mxu0 %vm518_vm0, %v517_v0 }
  0x56   :  { %366 = vmatprep.subr.bf16.mxu0 %v517_v0  ;;  %p489_p8 = pnand %p488_p7, %p482_p4 }
  0x59   :  { %367 = vmatpush3.bf16.msra.mxu0 %v386_v10 }
  0x5c   :  { %369 = vmatmul.mubr.msk.bf16.vlgmr.msra.gmra.mrb[4].mxu0 %vm106_vm1, %v208_v12 }
 0x127   :  { %v144_v15 = vpop.f32.mrb[0].mxu0  ;;  %v199_v16 = vpop.f32.mrb[0].mxu1 }
 0x128   :  { %v354_v18 = vpop.f32.mrb[1].mxu0  ;;  %v200_v19 = vadd.f32 %v199_v16, %v144_v15  ;;  %v362_v20 = vpop.f32.mrb[1].mxu1 }
 0x129   :  { %v147_v21 = vpop.f32.mrb[2].mxu0  ;;  %v202_v22 = vpop.f32.mrb[2].mxu1 }
 0x12a   :  { %v355_v23 = vpop.f32.mrb[3].mxu0  ;;  %v206_v25 = vadd.f32 %v205_v17, %v200_v19  ;;  %v363_v26 = vpop.f32.mrb[3].mxu1 }
 0x12c   :  { %v271_v27 = vrot.slane %v206_v25, %v270_v24 }
 0x12f   :  { %v262_v28 = vpop.f32.mrb[4].mxu0 }
 0x130   :  { %v272_v29 = vadd.f32 %v271_v27, %v262_v28  ;;  %v370_v30 = vpop.f32.mrb[5].mxu0 }
 0x131   :  { %v265_v31 = vpop.f32.mrb[6].mxu0 }
 0x132   :  { %387 = vtanh.f32 %v272_v29  ;;  %v371_v32 = vpop.f32.mrb[7].mxu0 }
 0x13c   :  { %v388_v34 = vpop.eup %387 }
 0x13d   :  { %v281_v35 = vmul.f32 %v388_v34, %v338_v33 }
 0x13f   :  { %v282_v36 = vsel %vm106_vm1, %v281_v35, 0.0 }
 0x140   :  { %283 = vadd.xlane.f32.xlu0 %v282_v36 }
 0x1cd   :  { %v284_v37 = vpop.xlane.xlu0 %283 }
 0x1ce   :  { %v285_v38 = vrot.slane %v284_v37, 4 }
 0x1d0   :  { %v286_v39 = vmax.f32 %v284_v37, %v285_v38 }
 0x1d2   :  { %v287_v40 = vrot.slane %v286_v39, 2 }
 0x1d4   :  { %v288_v41 = vmax.f32 %v286_v39, %v287_v40 }
 0x1d6   :  { %v289_v42 = vrot.slane %v288_v41, 1 }
 0x1d8   :  { %v290_v43 = vmax.f32 %v288_v41, %v289_v42 }
 0x1da   :  { %v291_v44 = vsub.f32 %v284_v37, %v290_v43 }
 0x1dc   :  { %v292_v45 = vmul.f32 1.442695, %v291_v44 }
 0x1de   :  { %389 = vpow2.f32 %v292_v45 }
 0x1e8   :  { %v390_v46 = vpop.eup %389 }
 0x1e9   :  { %v294_v47 = vrot.slane %v390_v46, 4 }
 0x1eb   :  { %v295_v48 = vadd.f32 %v390_v46, %v294_v47 }
 0x1ed   :  { %v296_v49 = vrot.slane %v295_v48, 2 }
 0x1ef   :  { %v297_v50 = vadd.f32 %v296_v49, %v295_v48 }
 0x1f1   :  { %v298_v51 = vrot.slane %v297_v50, 1 }
 0x1f3   :  { %v299_v52 = vadd.f32 %v298_v51, %v297_v50 }
 0x1f5   :  { %391 = vrcp.f32 %v299_v52 }
 0x1ff   :  { %v392_v53 = vpop.eup %391 }
 0x200   :  { %v301_v54 = vmul.f32 %v392_v53, %v390_v46 }
 0x202   :  { %v302_v55 = vmul.f32 %v301_v54, %v207_v11 }
 0x204   :  { %v303_v56 = vsel %vm106_vm1, %v302_v55, 0.0 }
 0x205   :  { %v304_v57 = vrot.slane %v303_v56, 4 }
 0x207   :  { %v305_v58 = vadd.f32 %v304_v57, %v303_v56 }
 0x209   :  { %v306_v59 = vrot.slane %v305_v58, 2 }
 0x20b   :  { %v307_v60 = vadd.f32 %v306_v59, %v305_v58 }
 0x20d   :  { %v308_v61 = vrot.slane %v307_v60, 1 }
 0x20f   :  { %v309_v62 = vadd.f32 %v308_v61, %v307_v60 }
 0x211   :  { %311 = vst.msk [vmem:[#allocation10] sm:$0x1] %vm310_vm2, %v309_v62 }
 0x212   :  { %492 = shalt.err (!%p489_p8)
}
 0x213   :  { %s493_s18 = scalar_lea.hbm %s656_s8, 16 }
 0x214   :  { %p494_p9 = scmp.ne.s32.totalorder %s656_s8, %s493_s18  ;;  %p497_p10 = scmp.lt.u32.totalorder %s493_s18, %s656_s8 }
 0x216   :  { %p499_p11 = pnand %p497_p10, %p494_p9 }
 0x218   :  { %502 = shalt.err (!%p499_p11)
}
 0x219   :  { %321 = dma.vmem_to_hbm [thread:$0]  %s319_s7, 16, %s656_s8, [#allocation4]  }
 0x21a   :  { %509 = dma.done.wait [#allocation4], 16  }
 0x21b   :  { %510 = vsyncadd [#allocation4], 4294967280 }
 0x21c   :  { %325 = vsyncpa [#allocation3], 1 }
 0x21d   :  { %326 = vsyncpa [#allocation6], 1 }
 0x21e   :  { %327 = vsyncpa [#allocation9], 1 }
 0x21f   :  { %328 = vsyncpa [#allocation4], 1 }

</bundles_post_ra>
